<compile_context>
chip_gen: v7x
topology: tpu7x:2x2x1
jax: 0.10.0
libtpu: 0.0.40
codegen_flags: <defaults>
</compile_context>

<pallas_src>
import functools

import jax
import jax.numpy as jnp
from jax.experimental import pallas as pl
from jax.experimental.pallas import tpu as pltpu


def lstm_tagger_kernel(sent_ref,                       # SMEM (B, S) int32 (scalar prefetch)
                       emb_ref, wih_ref, whh_ref, b_ref, wtag_ref, btag_ref,
                       out_ref,                        # VMEM (S, T) block for sentence b
                       *, hidden_dim, vocab_size, seq_len):
    H = hidden_dim
    V = vocab_size
    S = seq_len
    b = pl.program_id(0)

    # ---- Hoisted weight loads (one vld each, reused across the unroll) ----
    emb = emb_ref[...]        # (V, E)
    wih = wih_ref[...]        # (E, 4H)
    whh = whh_ref[...]        # (H, 4H)
    bias = b_ref[...]         # (1, 4H)
    wtag = wtag_ref[...]      # (H, T)
    btag = btag_ref[...]      # (1, T)

    # ---- Vectorized embedding gather: one-hot (S,V) @ (V,E) on the MXU ----
    col = jax.lax.broadcasted_iota(jnp.int32, (1, V), 1)
    one_hot = jnp.concatenate(
        [(col == sent_ref[b, t]).astype(jnp.float32) for t in range(S)],
        axis=0)                                                     # (S, V)
    x = jnp.dot(one_hot, emb, preferred_element_type=jnp.float32)   # (S, E)

    # ---- Hoisted input projection: one (S,E)@(E,4H) matmul for all steps ---
    gates_x = (jnp.dot(x, wih, preferred_element_type=jnp.float32)
               + bias)                                               # (S, 4H)

    # ---- Fused gate nonlinearity constants (hoisted out of the loop) -------
    # Gate columns are pre-permuted to [i, f, o, g]; the first 3H lanes need
    # sigmoid, the last H need tanh.  sigmoid(x) = 0.5*tanh(0.5*x) + 0.5, so
    # one tanh over the whole (1,4H) vreg + one VPU FMA covers all gates.
    lane = jax.lax.broadcasted_iota(jnp.int32, (1, 4 * H), 1)
    is_sig = lane < 3 * H
    pre_scale = jnp.where(is_sig, 0.5, 1.0)   # multiply-by-0.5 is exact in f32
    post_a = pre_scale                        # 0.5 on sigmoid lanes, 1.0 on tanh
    post_b = jnp.where(is_sig, 0.5, 0.0)      # +0.5 on sigmoid lanes

    # ---- Recurrence: fully unrolled (S static & small), h/c/h_t in vregs ---
    h = jnp.zeros((1, H), jnp.float32)
    c = jnp.zeros((1, H), jnp.float32)
    hs = []
    for t in range(S):
        gates = gates_x[t:t + 1, :] + jnp.dot(
            h, whh, preferred_element_type=jnp.float32)              # (1, 4H)
        act = post_a * jnp.tanh(gates * pre_scale) + post_b          # (1, 4H)
        i_g = act[:, 0:H]
        f_g = act[:, H:2 * H]
        o_g = act[:, 2 * H:3 * H]
        g_g = act[:, 3 * H:]
        c = f_g * c + i_g * g_g
        h = o_g * jnp.tanh(c)
        hs.append(h)

    lstm_out = jnp.concatenate(hs, axis=0)                           # (S, H)

    # ---- hidden2tag + log_softmax(dim=1) -----------------------------------
    tag_space = (jnp.dot(lstm_out, wtag, preferred_element_type=jnp.float32)
                 + btag)                                             # (S, T)
    m = jnp.max(tag_space, axis=1, keepdims=True)
    z = tag_space - m
    lse = jnp.log(jnp.sum(jnp.exp(z), axis=1, keepdims=True))
    out_ref[...] = z - lse


def lstm_tagger_forward(sentences, params, *, hidden_dim):
    """Run the fused tagger.  Accepts (S,) or a batch (B, S) of sentences."""
    squeeze = sentences.ndim == 1
    if squeeze:
        sentences = sentences[None, :]
    B, S = sentences.shape
    emb = params["embedding"]
    V = emb.shape[0]
    T = params["b_tag"].shape[-1]

    kernel = functools.partial(lstm_tagger_kernel,
                               hidden_dim=hidden_dim, vocab_size=V, seq_len=S)
    grid_spec = pltpu.PrefetchScalarGridSpec(
        num_scalar_prefetch=1,
        grid=(B,),
        in_specs=[pl.BlockSpec(memory_space=pltpu.MemorySpace.VMEM)] * 6,
        out_specs=pl.BlockSpec((None, S, T), lambda b, sent: (b, 0, 0)),
        scratch_shapes=[],
    )
    out = pl.pallas_call(
        kernel,
        out_shape=jax.ShapeDtypeStruct((B, S, T), jnp.float32),
        grid_spec=grid_spec,
        compiler_params=pltpu.CompilerParams(
            dimension_semantics=("parallel",)),
    )(sentences.astype(jnp.int32), emb,
      params["w_ih_t"], params["w_hh_t"], params["b"],
      params["w_tag_t"], params["b_tag"])
    return out[0] if squeeze else out


def lstm_tagger_reference(sentence, params, *, hidden_dim):
    """Pure-JAX reference with standard LSTM math (gate columns [i,f,o,g])."""
    H = hidden_dim
    embeds = jnp.take(params["embedding"], sentence, axis=0)

    def step(carry, x_t):
        h, c = carry
        gates = x_t[None, :] @ params["w_ih_t"] + h @ params["w_hh_t"] + params["b"]
        i_g = jax.nn.sigmoid(gates[:, 0:H])
        f_g = jax.nn.sigmoid(gates[:, H:2 * H])
        o_g = jax.nn.sigmoid(gates[:, 2 * H:3 * H])
        g_g = jnp.tanh(gates[:, 3 * H:4 * H])
        c = f_g * c + i_g * g_g
        h = o_g * jnp.tanh(c)
        return (h, c), h[0]

    h0 = jnp.zeros((1, H), jnp.float32)
    c0 = jnp.zeros((1, H), jnp.float32)
    _, lstm_out = jax.lax.scan(step, (h0, c0), embeds)
    tag_space = lstm_out @ params["w_tag_t"] + params["b_tag"]
    return jax.nn.log_softmax(tag_space, axis=1)


def _reorder_ifgo_to_ifog(w):
    """Permute last-dim gate blocks from PyTorch [i,f,g,o] to [i,f,o,g]."""
    i, f, g, o = jnp.split(w, 4, axis=-1)
    return jnp.concatenate([i, f, o, g], axis=-1)


def init_params(key, vocab_size, embedding_dim, hidden_dim, tagset_size):
    ks = jax.random.split(key, 7)
    k = 1.0 / jnp.sqrt(hidden_dim)
    u = lambda kk, shape, s: jax.random.uniform(kk, shape, jnp.float32, -s, s)
    # PyTorch shapes: emb (V,E), w_ih (4H,E), w_hh (4H,H), b_ih/b_hh (4H,),
    # hidden2tag weight (T,H), bias (T,); PyTorch gate order is i,f,g,o.
    w_ih = u(ks[1], (4 * hidden_dim, embedding_dim), k)
    w_hh = u(ks[2], (4 * hidden_dim, hidden_dim), k)
    b_ih = u(ks[3], (4 * hidden_dim,), k)
    b_hh = u(ks[4], (4 * hidden_dim,), k)
    w_tag = u(ks[5], (tagset_size, hidden_dim), k)
    b_tag = u(ks[6], (tagset_size,), k)
    return {
        "embedding": jax.random.normal(ks[0], (vocab_size, embedding_dim),
                                       jnp.float32),
        # Pre-transposed to "x @ W" form and gate columns permuted to i,f,o,g.
        "w_ih_t": _reorder_ifgo_to_ifog(w_ih.T),               # (E, 4H)
        "w_hh_t": _reorder_ifgo_to_ifog(w_hh.T),               # (H, 4H)
        "b": _reorder_ifgo_to_ifog((b_ih + b_hh)[None, :]),    # (1, 4H)
        "w_tag_t": w_tag.T,                                    # (H, T)
        "b_tag": b_tag[None, :],                               # (1, T)
    }


if __name__ == "__main__":
    EMBEDDING_DIM = 32
    HIDDEN_DIM = 32
    VOCAB_SIZE = 16
    TAGSET_SIZE = 8
    SEQ_LEN = 8
    BATCH = 2

    key = jax.random.PRNGKey(0)
    pkey, skey = jax.random.split(key)
    params = init_params(pkey, VOCAB_SIZE, EMBEDDING_DIM, HIDDEN_DIM, TAGSET_SIZE)
    sentences = jax.random.randint(skey, (BATCH, SEQ_LEN), 0, VOCAB_SIZE,
                                   dtype=jnp.int32)

    # Batched path (grid over sentences, "parallel" semantics).
    out = lstm_tagger_forward(sentences, params, hidden_dim=HIDDEN_DIM)
    out = jax.block_until_ready(out)

    ref = jax.vmap(
        lambda s: lstm_tagger_reference(s, params, hidden_dim=HIDDEN_DIM)
    )(sentences)
    assert out.shape == (BATCH, SEQ_LEN, TAGSET_SIZE)
    assert jnp.allclose(out, ref, atol=1e-5, rtol=1e-5)

    # Single-sentence path (exact semantics of the original PyTorch module).
    out1 = lstm_tagger_forward(sentences[0], params, hidden_dim=HIDDEN_DIM)
    out1 = jax.block_until_ready(out1)
    assert out1.shape == (SEQ_LEN, TAGSET_SIZE)
    assert jnp.allclose(out1, ref[0], atol=1e-5, rtol=1e-5)

    print("KERNEL_OK")
</pallas_src>

<mosaic_0001>
module attributes {stable_mosaic.version = 11 : i64} {
  func.func @lstm_tagger_kernel(%arg0: i32, %arg1: memref<2x8xi32, #tpu.memory_space<smem>>, %arg2: memref<16x32xf32, #tpu.memory_space<vmem>>, %arg3: memref<32x128xf32, #tpu.memory_space<vmem>>, %arg4: memref<32x128xf32, #tpu.memory_space<vmem>>, %arg5: memref<1x128xf32, #tpu.memory_space<vmem>>, %arg6: memref<32x8xf32, #tpu.memory_space<vmem>>, %arg7: memref<1x8xf32, #tpu.memory_space<vmem>>, %arg8: memref<1x8x8xf32, #tpu.memory_space<vmem>>) attributes {dimension_semantics = [#tpu.dimension_semantics<parallel>], iteration_bounds = array<i64: 2>, scalar_prefetch = 1 : i64, scratch_operands = 0 : i64, tpu.core_type = #tpu.core_type<tc>, window_params = [{pipeline_mode = #tpu.pipeline_mode<synchronous>, transform_indices = @transform_0, window_bounds = array<i64: 16, 32>}, {pipeline_mode = #tpu.pipeline_mode<synchronous>, transform_indices = @transform_1, window_bounds = array<i64: 32, 128>}, {pipeline_mode = #tpu.pipeline_mode<synchronous>, transform_indices = @transform_2, window_bounds = array<i64: 32, 128>}, {pipeline_mode = #tpu.pipeline_mode<synchronous>, transform_indices = @transform_3, window_bounds = array<i64: 1, 128>}, {pipeline_mode = #tpu.pipeline_mode<synchronous>, transform_indices = @transform_4, window_bounds = array<i64: 32, 8>}, {pipeline_mode = #tpu.pipeline_mode<synchronous>, transform_indices = @transform_5, window_bounds = array<i64: 1, 8>}, {transform_indices = @transform_6, window_bounds = array<i64: 1, 8, 8>}]} {
    %c0 = arith.constant 0 : index
    %c0_0 = arith.constant 0 : index
    %0 = vector.load %arg2[%c0, %c0_0] : memref<16x32xf32, #tpu.memory_space<vmem>>, vector<16x32xf32>
    %c0_1 = arith.constant 0 : index
    %c0_2 = arith.constant 0 : index
    %1 = vector.load %arg3[%c0_1, %c0_2] : memref<32x128xf32, #tpu.memory_space<vmem>>, vector<32x128xf32>
    %c0_3 = arith.constant 0 : index
    %c0_4 = arith.constant 0 : index
    %2 = vector.load %arg4[%c0_3, %c0_4] : memref<32x128xf32, #tpu.memory_space<vmem>>, vector<32x128xf32>
    %c0_5 = arith.constant 0 : index
    %c0_6 = arith.constant 0 : index
    %3 = vector.load %arg5[%c0_5, %c0_6] : memref<1x128xf32, #tpu.memory_space<vmem>>, vector<1x128xf32>
    %c0_7 = arith.constant 0 : index
    %c0_8 = arith.constant 0 : index
    %4 = vector.load %arg6[%c0_7, %c0_8] : memref<32x8xf32, #tpu.memory_space<vmem>>, vector<32x8xf32>
    %c0_9 = arith.constant 0 : index
    %c0_10 = arith.constant 0 : index
    %5 = vector.load %arg7[%c0_9, %c0_10] : memref<1x8xf32, #tpu.memory_space<vmem>>, vector<1x8xf32>
    %6 = tpu.iota {dimensions = array<i32: 1>} : vector<1x16xi32>
    %7 = arith.index_cast %arg0 : i32 to index
    %c0_11 = arith.constant 0 : index
    %8 = memref.load %arg1[%7, %c0_11] : memref<2x8xi32, #tpu.memory_space<smem>>
    %9 = vector.broadcast %8 : i32 to vector<1x16xi32>
    %10 = arith.cmpi eq, %6, %9 : vector<1x16xi32>
    %11 = arith.extui %10 : vector<1x16xi1> to vector<1x16xi32>
    %12 = arith.sitofp %11 : vector<1x16xi32> to vector<1x16xf32>
    %13 = arith.index_cast %arg0 : i32 to index
    %c1 = arith.constant 1 : index
    %14 = memref.load %arg1[%13, %c1] : memref<2x8xi32, #tpu.memory_space<smem>>
    %15 = vector.broadcast %14 : i32 to vector<1x16xi32>
    %16 = arith.cmpi eq, %6, %15 : vector<1x16xi32>
    %17 = arith.extui %16 : vector<1x16xi1> to vector<1x16xi32>
    %18 = arith.sitofp %17 : vector<1x16xi32> to vector<1x16xf32>
    %19 = arith.index_cast %arg0 : i32 to index
    %c2 = arith.constant 2 : index
    %20 = memref.load %arg1[%19, %c2] : memref<2x8xi32, #tpu.memory_space<smem>>
    %21 = vector.broadcast %20 : i32 to vector<1x16xi32>
    %22 = arith.cmpi eq, %6, %21 : vector<1x16xi32>
    %23 = arith.extui %22 : vector<1x16xi1> to vector<1x16xi32>
    %24 = arith.sitofp %23 : vector<1x16xi32> to vector<1x16xf32>
    %25 = arith.index_cast %arg0 : i32 to index
    %c3 = arith.constant 3 : index
    %26 = memref.load %arg1[%25, %c3] : memref<2x8xi32, #tpu.memory_space<smem>>
    %27 = vector.broadcast %26 : i32 to vector<1x16xi32>
    %28 = arith.cmpi eq, %6, %27 : vector<1x16xi32>
    %29 = arith.extui %28 : vector<1x16xi1> to vector<1x16xi32>
    %30 = arith.sitofp %29 : vector<1x16xi32> to vector<1x16xf32>
    %31 = arith.index_cast %arg0 : i32 to index
    %c4 = arith.constant 4 : index
    %32 = memref.load %arg1[%31, %c4] : memref<2x8xi32, #tpu.memory_space<smem>>
    %33 = vector.broadcast %32 : i32 to vector<1x16xi32>
    %34 = arith.cmpi eq, %6, %33 : vector<1x16xi32>
    %35 = arith.extui %34 : vector<1x16xi1> to vector<1x16xi32>
    %36 = arith.sitofp %35 : vector<1x16xi32> to vector<1x16xf32>
    %37 = arith.index_cast %arg0 : i32 to index
    %c5 = arith.constant 5 : index
    %38 = memref.load %arg1[%37, %c5] : memref<2x8xi32, #tpu.memory_space<smem>>
    %39 = vector.broadcast %38 : i32 to vector<1x16xi32>
    %40 = arith.cmpi eq, %6, %39 : vector<1x16xi32>
    %41 = arith.extui %40 : vector<1x16xi1> to vector<1x16xi32>
    %42 = arith.sitofp %41 : vector<1x16xi32> to vector<1x16xf32>
    %43 = arith.index_cast %arg0 : i32 to index
    %c6 = arith.constant 6 : index
    %44 = memref.load %arg1[%43, %c6] : memref<2x8xi32, #tpu.memory_space<smem>>
    %45 = vector.broadcast %44 : i32 to vector<1x16xi32>
    %46 = arith.cmpi eq, %6, %45 : vector<1x16xi32>
    %47 = arith.extui %46 : vector<1x16xi1> to vector<1x16xi32>
    %48 = arith.sitofp %47 : vector<1x16xi32> to vector<1x16xf32>
    %49 = arith.index_cast %arg0 : i32 to index
    %c7 = arith.constant 7 : index
    %50 = memref.load %arg1[%49, %c7] : memref<2x8xi32, #tpu.memory_space<smem>>
    %51 = vector.broadcast %50 : i32 to vector<1x16xi32>
    %52 = arith.cmpi eq, %6, %51 : vector<1x16xi32>
    %53 = arith.extui %52 : vector<1x16xi1> to vector<1x16xi32>
    %54 = arith.sitofp %53 : vector<1x16xi32> to vector<1x16xf32>
    %55 = tpu.concatenate %12, %18, %24, %30, %36, %42, %48, %54 in 0 : vector<1x16xf32>, vector<1x16xf32>, vector<1x16xf32>, vector<1x16xf32>, vector<1x16xf32>, vector<1x16xf32>, vector<1x16xf32>, vector<1x16xf32> -> vector<8x16xf32>
    %cst = arith.constant dense<0.000000e+00> : vector<8x32xf32>
    %56 = tpu.matmul %55, %0, %cst {dimension_numbers = #tpu.dot_dimension_numbers<[1], [0], [0], [1], [0, 0, 1, 1], [], []>} : vector<8x16xf32>, vector<16x32xf32>, vector<8x32xf32> -> vector<8x32xf32>
    %cst_12 = arith.constant dense<0.000000e+00> : vector<8x128xf32>
    %57 = tpu.matmul %56, %1, %cst_12 {dimension_numbers = #tpu.dot_dimension_numbers<[1], [0], [0], [1], [0, 0, 1, 1], [], []>} : vector<8x32xf32>, vector<32x128xf32>, vector<8x128xf32> -> vector<8x128xf32>
    %58 = vector.broadcast %3 : vector<1x128xf32> to vector<8x128xf32>
    %59 = arith.addf %57, %58 : vector<8x128xf32>
    %60 = tpu.iota {dimensions = array<i32: 1>} : vector<1x128xi32>
    %c96_i32 = arith.constant 96 : i32
    %61 = vector.broadcast %c96_i32 : i32 to vector<1x128xi32>
    %62 = arith.cmpi slt, %60, %61 : vector<1x128xi32>
    %cst_13 = arith.constant 5.000000e-01 : f32
    %cst_14 = arith.constant 1.000000e+00 : f32
    %63 = vector.broadcast %cst_13 : f32 to vector<1x128xf32>
    %64 = vector.broadcast %cst_14 : f32 to vector<1x128xf32>
    %65 = arith.select %62, %63, %64 : vector<1x128xi1>, vector<1x128xf32>
    %cst_15 = arith.constant 5.000000e-01 : f32
    %cst_16 = arith.constant 0.000000e+00 : f32
    %66 = vector.broadcast %cst_15 : f32 to vector<1x128xf32>
    %67 = vector.broadcast %cst_16 : f32 to vector<1x128xf32>
    %68 = arith.select %62, %66, %67 : vector<1x128xi1>, vector<1x128xf32>
    %cst_17 = arith.constant 0.000000e+00 : f32
    %69 = vector.broadcast %cst_17 : f32 to vector<1x32xf32>
    %cst_18 = arith.constant 0.000000e+00 : f32
    %70 = vector.broadcast %cst_18 : f32 to vector<1x32xf32>
    %71 = vector.extract_strided_slice %59 {offsets = [0, 0], sizes = [1, 128], strides = [1, 1]} : vector<8x128xf32> to vector<1x128xf32>
    %cst_19 = arith.constant dense<0.000000e+00> : vector<1x128xf32>
    %72 = tpu.matmul %69, %2, %cst_19 {dimension_numbers = #tpu.dot_dimension_numbers<[1], [0], [0], [1], [0, 0, 1, 1], [], []>} : vector<1x32xf32>, vector<32x128xf32>, vector<1x128xf32> -> vector<1x128xf32>
    %73 = arith.addf %71, %72 : vector<1x128xf32>
    %74 = arith.mulf %73, %65 : vector<1x128xf32>
    %75 = math.tanh %74 : vector<1x128xf32>
    %76 = arith.mulf %65, %75 : vector<1x128xf32>
    %77 = arith.addf %76, %68 : vector<1x128xf32>
    %78 = vector.extract_strided_slice %77 {offsets = [0, 0], sizes = [1, 32], strides = [1, 1]} : vector<1x128xf32> to vector<1x32xf32>
    %79 = vector.extract_strided_slice %77 {offsets = [0, 32], sizes = [1, 32], strides = [1, 1]} : vector<1x128xf32> to vector<1x32xf32>
    %80 = vector.extract_strided_slice %77 {offsets = [0, 64], sizes = [1, 32], strides = [1, 1]} : vector<1x128xf32> to vector<1x32xf32>
    %81 = vector.extract_strided_slice %77 {offsets = [0, 96], sizes = [1, 32], strides = [1, 1]} : vector<1x128xf32> to vector<1x32xf32>
    %82 = arith.mulf %79, %70 : vector<1x32xf32>
    %83 = arith.mulf %78, %81 : vector<1x32xf32>
    %84 = arith.addf %82, %83 : vector<1x32xf32>
    %85 = math.tanh %84 : vector<1x32xf32>
    %86 = arith.mulf %80, %85 : vector<1x32xf32>
    %87 = vector.extract_strided_slice %59 {offsets = [1, 0], sizes = [1, 128], strides = [1, 1]} : vector<8x128xf32> to vector<1x128xf32>
    %cst_20 = arith.constant dense<0.000000e+00> : vector<1x128xf32>
    %88 = tpu.matmul %86, %2, %cst_20 {dimension_numbers = #tpu.dot_dimension_numbers<[1], [0], [0], [1], [0, 0, 1, 1], [], []>} : vector<1x32xf32>, vector<32x128xf32>, vector<1x128xf32> -> vector<1x128xf32>
    %89 = arith.addf %87, %88 : vector<1x128xf32>
    %90 = arith.mulf %89, %65 : vector<1x128xf32>
    %91 = math.tanh %90 : vector<1x128xf32>
    %92 = arith.mulf %65, %91 : vector<1x128xf32>
    %93 = arith.addf %92, %68 : vector<1x128xf32>
    %94 = vector.extract_strided_slice %93 {offsets = [0, 0], sizes = [1, 32], strides = [1, 1]} : vector<1x128xf32> to vector<1x32xf32>
    %95 = vector.extract_strided_slice %93 {offsets = [0, 32], sizes = [1, 32], strides = [1, 1]} : vector<1x128xf32> to vector<1x32xf32>
    %96 = vector.extract_strided_slice %93 {offsets = [0, 64], sizes = [1, 32], strides = [1, 1]} : vector<1x128xf32> to vector<1x32xf32>
    %97 = vector.extract_strided_slice %93 {offsets = [0, 96], sizes = [1, 32], strides = [1, 1]} : vector<1x128xf32> to vector<1x32xf32>
    %98 = arith.mulf %95, %84 : vector<1x32xf32>
    %99 = arith.mulf %94, %97 : vector<1x32xf32>
    %100 = arith.addf %98, %99 : vector<1x32xf32>
    %101 = math.tanh %100 : vector<1x32xf32>
    %102 = arith.mulf %96, %101 : vector<1x32xf32>
    %103 = vector.extract_strided_slice %59 {offsets = [2, 0], sizes = [1, 128], strides = [1, 1]} : vector<8x128xf32> to vector<1x128xf32>
    %cst_21 = arith.constant dense<0.000000e+00> : vector<1x128xf32>
    %104 = tpu.matmul %102, %2, %cst_21 {dimension_numbers = #tpu.dot_dimension_numbers<[1], [0], [0], [1], [0, 0, 1, 1], [], []>} : vector<1x32xf32>, vector<32x128xf32>, vector<1x128xf32> -> vector<1x128xf32>
    %105 = arith.addf %103, %104 : vector<1x128xf32>
    %106 = arith.mulf %105, %65 : vector<1x128xf32>
    %107 = math.tanh %106 : vector<1x128xf32>
    %108 = arith.mulf %65, %107 : vector<1x128xf32>
    %109 = arith.addf %108, %68 : vector<1x128xf32>
    %110 = vector.extract_strided_slice %109 {offsets = [0, 0], sizes = [1, 32], strides = [1, 1]} : vector<1x128xf32> to vector<1x32xf32>
    %111 = vector.extract_strided_slice %109 {offsets = [0, 32], sizes = [1, 32], strides = [1, 1]} : vector<1x128xf32> to vector<1x32xf32>
    %112 = vector.extract_strided_slice %109 {offsets = [0, 64], sizes = [1, 32], strides = [1, 1]} : vector<1x128xf32> to vector<1x32xf32>
    %113 = vector.extract_strided_slice %109 {offsets = [0, 96], sizes = [1, 32], strides = [1, 1]} : vector<1x128xf32> to vector<1x32xf32>
    %114 = arith.mulf %111, %100 : vector<1x32xf32>
    %115 = arith.mulf %110, %113 : vector<1x32xf32>
    %116 = arith.addf %114, %115 : vector<1x32xf32>
    %117 = math.tanh %116 : vector<1x32xf32>
    %118 = arith.mulf %112, %117 : vector<1x32xf32>
    %119 = vector.extract_strided_slice %59 {offsets = [3, 0], sizes = [1, 128], strides = [1, 1]} : vector<8x128xf32> to vector<1x128xf32>
    %cst_22 = arith.constant dense<0.000000e+00> : vector<1x128xf32>
    %120 = tpu.matmul %118, %2, %cst_22 {dimension_numbers = #tpu.dot_dimension_numbers<[1], [0], [0], [1], [0, 0, 1, 1], [], []>} : vector<1x32xf32>, vector<32x128xf32>, vector<1x128xf32> -> vector<1x128xf32>
    %121 = arith.addf %119, %120 : vector<1x128xf32>
    %122 = arith.mulf %121, %65 : vector<1x128xf32>
    %123 = math.tanh %122 : vector<1x128xf32>
    %124 = arith.mulf %65, %123 : vector<1x128xf32>
    %125 = arith.addf %124, %68 : vector<1x128xf32>
    %126 = vector.extract_strided_slice %125 {offsets = [0, 0], sizes = [1, 32], strides = [1, 1]} : vector<1x128xf32> to vector<1x32xf32>
    %127 = vector.extract_strided_slice %125 {offsets = [0, 32], sizes = [1, 32], strides = [1, 1]} : vector<1x128xf32> to vector<1x32xf32>
    %128 = vector.extract_strided_slice %125 {offsets = [0, 64], sizes = [1, 32], strides = [1, 1]} : vector<1x128xf32> to vector<1x32xf32>
    %129 = vector.extract_strided_slice %125 {offsets = [0, 96], sizes = [1, 32], strides = [1, 1]} : vector<1x128xf32> to vector<1x32xf32>
    %130 = arith.mulf %127, %116 : vector<1x32xf32>
    %131 = arith.mulf %126, %129 : vector<1x32xf32>
    %132 = arith.addf %130, %131 : vector<1x32xf32>
    %133 = math.tanh %132 : vector<1x32xf32>
    %134 = arith.mulf %128, %133 : vector<1x32xf32>
    %135 = vector.extract_strided_slice %59 {offsets = [4, 0], sizes = [1, 128], strides = [1, 1]} : vector<8x128xf32> to vector<1x128xf32>
    %cst_23 = arith.constant dense<0.000000e+00> : vector<1x128xf32>
    %136 = tpu.matmul %134, %2, %cst_23 {dimension_numbers = #tpu.dot_dimension_numbers<[1], [0], [0], [1], [0, 0, 1, 1], [], []>} : vector<1x32xf32>, vector<32x128xf32>, vector<1x128xf32> -> vector<1x128xf32>
    %137 = arith.addf %135, %136 : vector<1x128xf32>
    %138 = arith.mulf %137, %65 : vector<1x128xf32>
    %139 = math.tanh %138 : vector<1x128xf32>
    %140 = arith.mulf %65, %139 : vector<1x128xf32>
    %141 = arith.addf %140, %68 : vector<1x128xf32>
    %142 = vector.extract_strided_slice %141 {offsets = [0, 0], sizes = [1, 32], strides = [1, 1]} : vector<1x128xf32> to vector<1x32xf32>
    %143 = vector.extract_strided_slice %141 {offsets = [0, 32], sizes = [1, 32], strides = [1, 1]} : vector<1x128xf32> to vector<1x32xf32>
    %144 = vector.extract_strided_slice %141 {offsets = [0, 64], sizes = [1, 32], strides = [1, 1]} : vector<1x128xf32> to vector<1x32xf32>
    %145 = vector.extract_strided_slice %141 {offsets = [0, 96], sizes = [1, 32], strides = [1, 1]} : vector<1x128xf32> to vector<1x32xf32>
    %146 = arith.mulf %143, %132 : vector<1x32xf32>
    %147 = arith.mulf %142, %145 : vector<1x32xf32>
    %148 = arith.addf %146, %147 : vector<1x32xf32>
    %149 = math.tanh %148 : vector<1x32xf32>
    %150 = arith.mulf %144, %149 : vector<1x32xf32>
    %151 = vector.extract_strided_slice %59 {offsets = [5, 0], sizes = [1, 128], strides = [1, 1]} : vector<8x128xf32> to vector<1x128xf32>
    %cst_24 = arith.constant dense<0.000000e+00> : vector<1x128xf32>
    %152 = tpu.matmul %150, %2, %cst_24 {dimension_numbers = #tpu.dot_dimension_numbers<[1], [0], [0], [1], [0, 0, 1, 1], [], []>} : vector<1x32xf32>, vector<32x128xf32>, vector<1x128xf32> -> vector<1x128xf32>
    %153 = arith.addf %151, %152 : vector<1x128xf32>
    %154 = arith.mulf %153, %65 : vector<1x128xf32>
    %155 = math.tanh %154 : vector<1x128xf32>
    %156 = arith.mulf %65, %155 : vector<1x128xf32>
    %157 = arith.addf %156, %68 : vector<1x128xf32>
    %158 = vector.extract_strided_slice %157 {offsets = [0, 0], sizes = [1, 32], strides = [1, 1]} : vector<1x128xf32> to vector<1x32xf32>
    %159 = vector.extract_strided_slice %157 {offsets = [0, 32], sizes = [1, 32], strides = [1, 1]} : vector<1x128xf32> to vector<1x32xf32>
    %160 = vector.extract_strided_slice %157 {offsets = [0, 64], sizes = [1, 32], strides = [1, 1]} : vector<1x128xf32> to vector<1x32xf32>
    %161 = vector.extract_strided_slice %157 {offsets = [0, 96], sizes = [1, 32], strides = [1, 1]} : vector<1x128xf32> to vector<1x32xf32>
    %162 = arith.mulf %159, %148 : vector<1x32xf32>
    %163 = arith.mulf %158, %161 : vector<1x32xf32>
    %164 = arith.addf %162, %163 : vector<1x32xf32>
    %165 = math.tanh %164 : vector<1x32xf32>
    %166 = arith.mulf %160, %165 : vector<1x32xf32>
    %167 = vector.extract_strided_slice %59 {offsets = [6, 0], sizes = [1, 128], strides = [1, 1]} : vector<8x128xf32> to vector<1x128xf32>
    %cst_25 = arith.constant dense<0.000000e+00> : vector<1x128xf32>
    %168 = tpu.matmul %166, %2, %cst_25 {dimension_numbers = #tpu.dot_dimension_numbers<[1], [0], [0], [1], [0, 0, 1, 1], [], []>} : vector<1x32xf32>, vector<32x128xf32>, vector<1x128xf32> -> vector<1x128xf32>
    %169 = arith.addf %167, %168 : vector<1x128xf32>
    %170 = arith.mulf %169, %65 : vector<1x128xf32>
    %171 = math.tanh %170 : vector<1x128xf32>
    %172 = arith.mulf %65, %171 : vector<1x128xf32>
    %173 = arith.addf %172, %68 : vector<1x128xf32>
    %174 = vector.extract_strided_slice %173 {offsets = [0, 0], sizes = [1, 32], strides = [1, 1]} : vector<1x128xf32> to vector<1x32xf32>
    %175 = vector.extract_strided_slice %173 {offsets = [0, 32], sizes = [1, 32], strides = [1, 1]} : vector<1x128xf32> to vector<1x32xf32>
    %176 = vector.extract_strided_slice %173 {offsets = [0, 64], sizes = [1, 32], strides = [1, 1]} : vector<1x128xf32> to vector<1x32xf32>
    %177 = vector.extract_strided_slice %173 {offsets = [0, 96], sizes = [1, 32], strides = [1, 1]} : vector<1x128xf32> to vector<1x32xf32>
    %178 = arith.mulf %175, %164 : vector<1x32xf32>
    %179 = arith.mulf %174, %177 : vector<1x32xf32>
    %180 = arith.addf %178, %179 : vector<1x32xf32>
    %181 = math.tanh %180 : vector<1x32xf32>
    %182 = arith.mulf %176, %181 : vector<1x32xf32>
    %183 = vector.extract_strided_slice %59 {offsets = [7, 0], sizes = [1, 128], strides = [1, 1]} : vector<8x128xf32> to vector<1x128xf32>
    %cst_26 = arith.constant dense<0.000000e+00> : vector<1x128xf32>
    %184 = tpu.matmul %182, %2, %cst_26 {dimension_numbers = #tpu.dot_dimension_numbers<[1], [0], [0], [1], [0, 0, 1, 1], [], []>} : vector<1x32xf32>, vector<32x128xf32>, vector<1x128xf32> -> vector<1x128xf32>
    %185 = arith.addf %183, %184 : vector<1x128xf32>
    %186 = arith.mulf %185, %65 : vector<1x128xf32>
    %187 = math.tanh %186 : vector<1x128xf32>
    %188 = arith.mulf %65, %187 : vector<1x128xf32>
    %189 = arith.addf %188, %68 : vector<1x128xf32>
    %190 = vector.extract_strided_slice %189 {offsets = [0, 0], sizes = [1, 32], strides = [1, 1]} : vector<1x128xf32> to vector<1x32xf32>
    %191 = vector.extract_strided_slice %189 {offsets = [0, 32], sizes = [1, 32], strides = [1, 1]} : vector<1x128xf32> to vector<1x32xf32>
    %192 = vector.extract_strided_slice %189 {offsets = [0, 64], sizes = [1, 32], strides = [1, 1]} : vector<1x128xf32> to vector<1x32xf32>
    %193 = vector.extract_strided_slice %189 {offsets = [0, 96], sizes = [1, 32], strides = [1, 1]} : vector<1x128xf32> to vector<1x32xf32>
    %194 = arith.mulf %191, %180 : vector<1x32xf32>
    %195 = arith.mulf %190, %193 : vector<1x32xf32>
    %196 = arith.addf %194, %195 : vector<1x32xf32>
    %197 = math.tanh %196 : vector<1x32xf32>
    %198 = arith.mulf %192, %197 : vector<1x32xf32>
    %199 = tpu.concatenate %86, %102, %118, %134, %150, %166, %182, %198 in 0 : vector<1x32xf32>, vector<1x32xf32>, vector<1x32xf32>, vector<1x32xf32>, vector<1x32xf32>, vector<1x32xf32>, vector<1x32xf32>, vector<1x32xf32> -> vector<8x32xf32>
    %cst_27 = arith.constant dense<0.000000e+00> : vector<8x8xf32>
    %200 = tpu.matmul %199, %4, %cst_27 {dimension_numbers = #tpu.dot_dimension_numbers<[1], [0], [0], [1], [0, 0, 1, 1], [], []>} : vector<8x32xf32>, vector<32x8xf32>, vector<8x8xf32> -> vector<8x8xf32>
    %201 = vector.broadcast %5 : vector<1x8xf32> to vector<8x8xf32>
    %202 = arith.addf %200, %201 : vector<8x8xf32>
    %cst_28 = arith.constant dense<0xFF800000> : vector<8xf32>
    %203 = vector.multi_reduction <maximumf>, %202, %cst_28 [1] : vector<8x8xf32> to vector<8xf32>
    %204 = vector.shape_cast %203 : vector<8xf32> to vector<8x1xf32>
    %205 = vector.broadcast %204 : vector<8x1xf32> to vector<8x8xf32>
    %206 = arith.subf %202, %205 : vector<8x8xf32>
    %207 = math.exp %206 : vector<8x8xf32>
    %cst_29 = arith.constant dense<0.000000e+00> : vector<8xf32>
    %208 = vector.multi_reduction <add>, %207, %cst_29 [1] : vector<8x8xf32> to vector<8xf32>
    %209 = vector.shape_cast %208 : vector<8xf32> to vector<8x1xf32>
    %210 = math.log %209 : vector<8x1xf32>
    %211 = vector.broadcast %210 : vector<8x1xf32> to vector<8x8xf32>
    %212 = arith.subf %206, %211 : vector<8x8xf32>
    %c0_30 = arith.constant 0 : index
    %c0_31 = arith.constant 0 : index
    %c0_32 = arith.constant 0 : index
    %213 = vector.load %arg8[%c0_30, %c0_31, %c0_32] : memref<1x8x8xf32, #tpu.memory_space<vmem>>, vector<1x8x8xf32>
    %214 = vector.shape_cast %213 : vector<1x8x8xf32> to vector<8x8xf32>
    %215 = vector.shape_cast %212 : vector<8x8xf32> to vector<1x8x8xf32>
    tpu.vector_store %arg8[%c0_30, %c0_31, %c0_32], %215 {strides = array<i32>} : memref<1x8x8xf32, #tpu.memory_space<vmem>>, vector<1x8x8xf32>,
    return
  }
  func.func @transform_0(%arg0: i32, %arg1: memref<2x8xi32, #tpu.memory_space<smem>>) -> (i32, i32) {
    %c0_i32 = arith.constant 0 : i32
    %c0_i32_0 = arith.constant 0 : i32
    %c0_i32_1 = arith.constant 0 : i32
    return %c0_i32, %c0_i32_0 : i32, i32
  }
  func.func @transform_1(%arg0: i32, %arg1: memref<2x8xi32, #tpu.memory_space<smem>>) -> (i32, i32) {
    %c0_i32 = arith.constant 0 : i32
    %c0_i32_0 = arith.constant 0 : i32
    %c0_i32_1 = arith.constant 0 : i32
    return %c0_i32, %c0_i32_0 : i32, i32
  }
  func.func @transform_2(%arg0: i32, %arg1: memref<2x8xi32, #tpu.memory_space<smem>>) -> (i32, i32) {
    %c0_i32 = arith.constant 0 : i32
    %c0_i32_0 = arith.constant 0 : i32
    %c0_i32_1 = arith.constant 0 : i32
    return %c0_i32, %c0_i32_0 : i32, i32
  }
  func.func @transform_3(%arg0: i32, %arg1: memref<2x8xi32, #tpu.memory_space<smem>>) -> (i32, i32) {
    %c0_i32 = arith.constant 0 : i32
    %c0_i32_0 = arith.constant 0 : i32
    %c0_i32_1 = arith.constant 0 : i32
    return %c0_i32, %c0_i32_0 : i32, i32
  }
  func.func @transform_4(%arg0: i32, %arg1: memref<2x8xi32, #tpu.memory_space<smem>>) -> (i32, i32) {
    %c0_i32 = arith.constant 0 : i32
    %c0_i32_0 = arith.constant 0 : i32
    %c0_i32_1 = arith.constant 0 : i32
    return %c0_i32, %c0_i32_0 : i32, i32
  }
  func.func @transform_5(%arg0: i32, %arg1: memref<2x8xi32, #tpu.memory_space<smem>>) -> (i32, i32) {
    %c0_i32 = arith.constant 0 : i32
    %c0_i32_0 = arith.constant 0 : i32
    %c0_i32_1 = arith.constant 0 : i32
    return %c0_i32, %c0_i32_0 : i32, i32
  }
  func.func @transform_6(%arg0: i32, %arg1: memref<2x8xi32, #tpu.memory_space<smem>>) -> (i32, i32, i32) {
    %c0_i32 = arith.constant 0 : i32
    %c0_i32_0 = arith.constant 0 : i32
    %c0_i32_1 = arith.constant 0 : i32
    return %arg0, %c0_i32, %c0_i32_0 : i32, i32, i32
  }
}

</mosaic_0001>

<bundles_post_ra>
// kernel: tpu_custom_call.1
= control target key start
LH: loop header
LB: loop body
LE: loop exit
PB: predicated region body
PF: predicated region fallthrough
CT: control target
= control target key end

     0   :  { %s2493_s0 = inlined_call_operand.vmem [shape: s32[2,8], index: 0, kind: input, shape index: {}]   ;;  %s2494_s1 = inlined_call_operand.hbm [shape: f32[16,32], index: 1, kind: input, shape index: {}]   ;;  %s2495_s2 = inlined_call_operand.vmem [shape: f32[32,128], index: 2, kind: input, shape index: {}]   ;;  %s2496_s3 = inlined_call_operand.hbm [shape: f32[32,128], index: 3, kind: input, shape index: {}]   ;;  %s2497_s4 = inlined_call_operand.vmem [shape: f32[1,128], index: 4, kind: input, shape index: {}]   ;;  %s2498_s5 = inlined_call_operand.vmem [shape: f32[32,8], index: 5, kind: input, shape index: {}]   ;;  %s2499_s6 = inlined_call_operand.vmem [shape: f32[1,8], index: 6, kind: input, shape index: {}]   ;;  %s2500_s7 = inlined_call_operand.hbm [shape: f32[2,8,8], index: 7, kind: output, shape index: {}]  }
   0x1   :  { %s12_s26 = sshll.u32 %s2493_s0, 4  ;;  %s13_s26 = int_to_ptr.vmem [resolvable:$true] %s12_s26 }
   0x2   :  { %s1882_s27 = scalar_lea.vmem %s13_s26, 32  ;;  %p1887_p1 = scmp.lt.s32.totalorder %s13_s26, %s13_s26 }
   0x3   :  { %p1883_p0 = scmp.ne.s32.totalorder %s13_s26, %s1882_s27  ;;  %p1888_p2 = scmp.lt.s32.totalorder %s1882_s27, %s1882_s27 }
   0x5   :  { %p1889_p3 = por %p1888_p2, %p1887_p1 }
   0x7   :  { %p1890_p4 = pnand %p1889_p3, %p1883_p0 }
   0x9   :  { %1893 = shalt.err (!%p1890_p4)  }
   0xa   :  { %s2024_s28 = smov [#allocation3]  }
   0xb   :  { %15 = dma.vmem_to_smem %s13_s26, 32, %s2024_s28, [#allocation2] }
   0xc   :  { %1994 = dma.done.wait [#allocation2], 32 }
   0xd   :  { %1995 = vsyncadd [#allocation2], 4294967264 }
   0xe   :  { %17 = sfence }
   0xf   :  { %18 = vsyncpa [#allocation5], 0 }
  0x10   :  { %19 = vsyncpa [#allocation8], 0 }
  0x11   :  { %20 = vsyncpa [#allocation6], 0 }
  0x12   :  { %22 = vsyncpa [#allocation6 + $0x1], 0  ;;  %s2079_s29 = smov 0   ;;  %s2081_s0 = smov 0  }
  0x13   :  { %s2083_s30 = smov 0   ;;  %s2085_s8 = smov 0  }
  0x14 LB: > { %s2100_s9 = sadd.s32 4294967295, %s2022_s8   ;;  %s1511_s10 = sadd.s32 4294967294, %s2022_s8   ;;  %s2022_s8 = sphi %s2085_s8, %s2518_s8   ;;  %s2018_s30 = sphi %s2083_s30, %s2517_s30   ;;  %s2014_s0 = sphi %s2081_s0, %s2516_s0   ;;  %s2010_s29 = sphi %s2079_s29, %s2515_s29  }
  0x15   : > { %s2104_s11 = sadd.s32 1, %s2022_s8   ;;  %s161_s12 = sadd.s32 1, %s2018_s30 }
  0x16   : > { %s158_s13 = ssub.s32 %s2022_s8, %s2104_s11  ;;  %p171_p5 = scmp.ne.s32.totalorder %s2018_s30, %s2014_s0 }
  0x17   : > { %p159_p6 = scmp.eq.s32.totalorder %s158_s13, 0  ;;  %p172_p7 = scmp.eq.s32.totalorder %s2100_s9, 1 }
  0x18   : > { %p177_p8 = scmp.ne.s32.totalorder %s2014_s0, %s2010_s29  ;;  %p178_p9 = scmp.eq.s32.totalorder %s1511_s10, 1 }
  0x19   : > { %s2115_s14 = scalar_select %p159_p6, %s2018_s30, %s161_s12  }
  0x1a   : > { %p2117_p10 = por %p172_p7, %p171_p5  ;;  %p2121_p11 = por %p178_p9, %p177_p8 }
  0x1b   : > { %p1512_p12 = scmp.ge.s32.totalorder %s2022_s8, 1  ;;  %p185_p13 = scmp.lt.s32.totalorder %s2022_s8, 3 }
  0x1c   : > { %s2504_s15 = scalar_select %p2117_p10, 1, 0 }
  0x1d   : > { %s2505_s16 = scalar_select %p2121_p11, 1, 0 }
  0x1e   : > { %p2501_p0 = scmp.eq.s32.totalorder %s2100_s9, 0  ;;  %p2128_p1 = pnand %p1512_p12, %p185_p13 }
  0x1f   : > { %s2025_s18 = smov [#allocation4]   ;;  %s2026_s21 = smov [#allocation7]  }
  0x20   : > { %s2506_s17 = scalar_select %p2128_p1, 1, 0 }
  0x21   : > { %s197_s19 = sshll.u32 %s2025_s18, 4  ;;  %p1787_p2 = pneg %p2128_p1  ;;  %s198_s19 = int_to_ptr.vmem [resolvable:$true] %s197_s19 }
  0x22   : > { %s213_s22 = sshll.u32 %s2026_s21, 4  ;;  %s1894_s25 = scalar_lea.hbm %s2494_s1, 256  ;;  %s2140_s22 = int_to_ptr.vmem [resolvable:$true] %s213_s22 }
  0x23   : > { %p2136_p3 = pnand %p2501_p0, %p1787_p2  ;;  %p1895_p4 = scmp.ne.s32.totalorder %s2494_s1, %s1894_s25 }
  0x24   : > { %p1901_p8 = scmp.lt.u32.totalorder %s1894_s25, %s2494_s1 }
  0x25   : > { %p1896_p5 = pneg %p2136_p3 }
  0x27   : > { %p1897_p6 = pnand %p1896_p5, %p1895_p4 }
  0x29   : > { %p1898_p7 = pneg %p1897_p6 }
  0x2b   : > { %p1903_p9 = pnand %p1901_p8, %p1898_p7 }
  0x2d   : > { %1906 = shalt.err (!%p1903_p9)
}
  0x2e   : > { %s1907_s12 = scalar_lea.vmem %s198_s19, 256  ;;  %p1915_p0 = scmp.lt.s32.totalorder %s198_s19, %s198_s19 }
  0x2f   : > { %p1908_p12 = scmp.ne.s32.totalorder %s198_s19, %s1907_s12  ;;  %p1916_p11 = scmp.lt.s32.totalorder %s1907_s12, %s1907_s12 }
  0x31   : > { %p1910_p13 = pnand %p1908_p12, %p1896_p5  ;;  %p1917_p10 = por %p1916_p11, %p1915_p0 }
  0x33   : > { %p1911_p2 = pneg %p1910_p13 }
  0x35   : > { %p1918_p1 = pnand %p1917_p10, %p1911_p2 }
  0x37   : > { %1921 = shalt.err (!%p1918_p1)
}
  0x38   : > { %s2027_s13 = smov 128   ;;  %s2028_s18 = smov 8  }
  0x39   : > { %1790 = dma.hbm_to_vmem [thread:$0]  (!%p2136_p3), %s2494_s1, 256, %s198_s19, [#allocation5], %s2027_s13, %s2027_s13, %s2028_s18  }
  0x3a   : > { %s1922_s26 = scalar_lea.hbm %s2496_s3, 512 }
  0x3b   : > { %p1923_p4 = scmp.ne.s32.totalorder %s2496_s3, %s1922_s26  ;;  %p1929_p0 = scmp.lt.u32.totalorder %s1922_s26, %s2496_s3 }
  0x3d   : > { %p1925_p10 = pnand %p1923_p4, %p1896_p5 }
  0x3f   : > { %p1926_p11 = pneg %p1925_p10 }
  0x41   : > { %p1931_p1 = pnand %p1929_p0, %p1926_p11 }
  0x43   : > { %1934 = shalt.err (!%p1931_p1)
}
  0x44   : > { %s1935_s19 = scalar_lea.vmem %s2140_s22, 512  ;;  %p1943_p9 = scmp.lt.s32.totalorder %s2140_s22, %s2140_s22 }
  0x45   : > { %p1936_p6 = scmp.ne.s32.totalorder %s2140_s22, %s1935_s19  ;;  %p1944_p12 = scmp.lt.s32.totalorder %s1935_s19, %s1935_s19 }
  0x47   : > { %p1938_p7 = pnand %p1936_p6, %p1896_p5  ;;  %p1945_p13 = por %p1944_p12, %p1943_p9 }
  0x49   : > { %p1939_p8 = pneg %p1938_p7 }
  0x4b   : > { %p1946_p2 = pnand %p1945_p13, %p1939_p8 }
  0x4d   : > { %1949 = shalt.err (!%p1946_p2)
}
  0x4e   : > { %1793 = dma.hbm_to_vmem [thread:$0]  (!%p2136_p3), %s2496_s3, 512, %s2140_s22, [#allocation8], %s2027_s13, %s2027_s13, %s2028_s18  }
  0x4f   : > { %p2508_p4 = scmp.ne.s32.totalorder %s2506_s17, 0 }
  0x50   : > { %p2509_p10 = scmp.eq.s32.totalorder (!%p2508_p4), %s2100_s9, 0 }
  0x51   : > { %238 = sbr.rel (%p2508_p4) target bundleno = 6560 (0x19a0), region = 44 }
  0x58   : > { %1997 = dma.done.wait (%p2509_p10), [#allocation5], 256   ;;  %p2510_p5 = pmov %p2509_p10 }
  0x5a   : > { %1999 = vsyncadd (%p2510_p5), [#allocation5], 4294967040  ;;  %p2511_p11 = pmov %p2510_p5 }
  0x5b   : > { %p2512_p0 = pmov %p2510_p5 }
  0x5c   : > { %2001 = dma.done.wait (%p2511_p11), [#allocation8], 512  }
  0x5d   : > { %2003 = vsyncadd (%p2512_p0), [#allocation8], 4294966784  ;;  %v283_v0 = vlaneseq  ;;  %s2200_s20 = sshll.u32 %s2100_s9, 7  ;;  %v2029_v1 = vmov 0.0|0.0   ;;  %vm2030_vm0 = vmmov 0   ;;  %v2031_v2 = vmov 0.0  }
  0x5e   : > { %1714 = vmatprep.subr.bf16.mxu0 %v2029_v1  ;;  %1601 = vmatprep.mubr.msk.f32.mxu0 %vm2030_vm0, %v2031_v2  ;;  %s286_s17 = sld [smem:[#allocation3 + %s2200_s20]]  ;;  %s291_s22 = sadd.s32 1, %s2200_s20  ;;  %vm333_vm1 = vcmask 1040384   ;;  %vm335_vm2 = vcmask 1041408   ;;  %vm337_vm3 = vcmask 1042432   ;;  %vm339_vm4 = vcmask 1043456  }
  0x5f   : > { %s2207_s13 = sld [smem:[#allocation3 + %s291_s22]]  ;;  %s297_s9 = sadd.s32 2, %s2200_s20  ;;  %1717 = vmatprep.subr.bf16.mxu1 %v2029_v1  ;;  %1612 = vmatprep.mubr.msk.f32.mxu1 %vm2030_vm0, %v2031_v2  ;;  %v2216_v3 = vand.u32 127, %v283_v0  ;;  %vm341_vm5 = vcmask 1044480   ;;  %vm343_vm6 = vcmask 1045504   ;;  %v267_v4 = vld [vmem:[#allocation4] sm:$0xff] }
  0x60   : > { %s2213_s18 = sld [smem:[#allocation3 + %s297_s9]]  ;;  %s303_s24 = sadd.s32 3, %s2200_s20  ;;  %v268_v5 = vld [vmem:[#allocation4 + $0x8] sm:$0xff]  ;;  %vm345_vm7 = vcmask 1046528   ;;  %v269_v7 = vld [vmem:[%s2495_s2] sm:$0xff]  ;;  %vm347_vm9 = vcmask 130048  }
  0x61   : > { %s2218_s25 = sld [smem:[#allocation3 + %s303_s24]]  ;;  %s309_s26 = sadd.s32 4, %s2200_s20  ;;  %v1715_v8 = vpack.c.bf16 %v268_v5, %v267_v4  ;;  %v270_v10 = vld [vmem:[%s2495_s2 + $0x8] sm:$0xff]  ;;  %v273_v11 = vld [vmem:[#allocation7] sm:$0xff]  ;;  %v274_v12 = vld [vmem:[#allocation7 + $0x8] sm:$0xff]  ;;  %v2032_v50 = vmov 1.0  }
  0x62   : > { %s2221_s27 = sld [smem:[#allocation3 + %s309_s26]]  ;;  %s315_s28 = sadd.s32 5, %s2200_s20  ;;  %v1718_v15 = vpack.c.bf16 %v270_v10, %v269_v7  ;;  %v2246_v18 = vpack.c.bf16 %v274_v12, %v273_v11  ;;  %v271_v25 = vld [vmem:[%s2495_s2 + $0x10] sm:$0xff]  ;;  %v272_v26 = vld [vmem:[%s2495_s2 + $0x18] sm:$0xff]  ;;  %v275_v38 = vld [vmem:[#allocation7 + $0x10] sm:$0xff] }
  0x63   : > { %s2224_s10 = sld [smem:[#allocation3 + %s315_s28]]  ;;  %s321_s12 = sadd.s32 6, %s2200_s20  ;;  %1716 = vmatpush3.bf16.msra.mxu0 %v1715_v8  ;;  %v1721_v35 = vpack.c.bf16 %v272_v26, %v271_v25  ;;  %v276_v39 = vld [vmem:[#allocation7 + $0x18] sm:$0xff]  ;;  %v1529_v46 = vld [vmem:[%s2497_s4] ss:$0 sm:$0xff] }
  0x64   : > { %v287_v6 = vstv %s286_s17  ;;  %s2227_s19 = sld [smem:[#allocation3 + %s321_s12]]  ;;  %s327_s21 = sadd.s32 7, %s2200_s20  ;;  %1719 = vmatpush3.bf16.msra.mxu1 %v1718_v15  ;;  %1723 = vmatprep.subr.bf16.mxu0 %v2029_v1  ;;  %v2281_v41 = vpack.c.bf16 %v276_v39, %v275_v38 }
  0x65   : > { %vm288_vm8 = vcmp.eq.s32.totalorder %v2216_v3, %v287_v6  ;;  %v293_v9 = vstv %s2207_s13  ;;  %s2235_s9 = sld [smem:[#allocation3 + %s327_s21]]  ;;  %1720 = vmatprep.subr.bf16.mxu1 %v2029_v1  ;;  %s2034_s12 = smov 64  }
  0x66   : > { %v1520_v13 = vsel %vm288_vm8, 1.0, %v2031_v2  ;;  %vm294_vm10 = vcmp.eq.s32.totalorder %v2216_v3, %v293_v9  ;;  %v299_v14 = vstv %s2213_s18  ;;  %s2450_s21 = scalar_lea.hbm %s2500_s7, %s2200_s20  ;;  %p2513_p1 = scmp.ne.s32.totalorder %s2504_s15, 0 }
  0x67   : > { %v1521_v16 = vsel %vm294_vm10, 1.0, %v2031_v2  ;;  %vm300_vm11 = vcmp.eq.s32.totalorder %v2216_v3, %v299_v14  ;;  %v305_v17 = vstv %s2218_s25  ;;  %vm501_vm10 = vcmp.lt.s32.totalorder %v2216_v3, 96  ;;  %s264_s25 = sand.u32 1, %s2014_s0  }
  0x68   : > { %v1522_v19 = vsel %vm300_vm11, 1.0, %v2031_v2  ;;  %vm306_vm12 = vcmp.eq.s32.totalorder %v2216_v3, %v305_v17  ;;  %v311_v20 = vstv %s2221_s27  ;;  %v334_v21 = vsel %vm333_vm1, %v1520_v13, %v1521_v16  ;;  %1722 = vmatpush3.bf16.msra.mxu1 %v1721_v35  ;;  %s1518_s27 = sshll.u32 %s264_s25, 3  ;;  %s1429_s23 = scalar_lea.sflag [#allocation6], %s264_s25 }
  0x69   : > { %v1523_v22 = vsel %vm306_vm12, 1.0, %v2031_v2  ;;  %vm312_vm13 = vcmp.eq.s32.totalorder %v2216_v3, %v311_v20  ;;  %v317_v23 = vstv %s2224_s10  ;;  %v336_v24 = vsel %vm335_vm2, %v334_v21, %v1522_v19  ;;  %1729 = vmatprep.subr.bf16.mxu1 %v2029_v1  ;;  %s2033_s10 = smov 32   ;;  %s266_s28 = scalar_lea.vmem [#allocation9], %s1518_s27 }
  0x6a   : > { %v1524_v27 = vsel %vm312_vm13, 1.0, %v2031_v2  ;;  %vm318_vm14 = vcmp.eq.s32.totalorder %v2216_v3, %v317_v23  ;;  %v323_v28 = vstv %s2227_s19  ;;  %v338_v29 = vsel %vm337_vm3, %v336_v24, %v1523_v22 }
  0x6b   : > { %v1525_v30 = vsel %vm318_vm14, 1.0, %v2031_v2  ;;  %vm324_vm15 = vcmp.eq.s32.totalorder %v2216_v3, %v323_v28  ;;  %v329_v31 = vstv %s2235_s9  ;;  %v340_v32 = vsel %vm339_vm4, %v338_v29, %v1524_v27  ;;  %s2035_s9 = smov [#allocation9]  }
  0x6c   : > { %v1526_v33 = vsel %vm324_vm15, 1.0, %v2031_v2  ;;  %vm330_vm8 = vcmp.eq.s32.totalorder %v2216_v3, %v329_v31  ;;  %v342_v34 = vsel %vm341_vm5, %v340_v32, %v1525_v30  ;;  %v2308_v51 = vsel %vm501_vm10, 0.5, %v2032_v50  ;;  %s1954_s24 = sshll.u32 %s2035_s9, 4  ;;  %s1955_s24 = int_to_ptr.vmem [resolvable:$false] %s1954_s24 }
  0x6d   : > { %v1527_v36 = vsel %vm330_vm8, 1.0, %v2031_v2  ;;  %v344_v37 = vsel %vm343_vm6, %v342_v34, %v1526_v33  ;;  %v2313_v55 = vsel %vm501_vm10, 0.5, %v2031_v2  ;;  %s1956_s26 = scalar_lea.vmem %s1955_s24, 256 }
  0x6e   : > { %v346_v40 = vsel %vm345_vm7, %v344_v37, %v1527_v36 }
  0x6f   : > { %1602 = vmatmul.mubr.msk.f32.vlgmr.msra.gmra.mrb[0].mxu0 %vm347_vm9, %v346_v40  ;;  %vm427_vm9 = vcmask 261120  }
  0x70   : > { %1725 = vmatpush3.bf16.msra.mxu0 %v2246_v18  ;;  %1623 = vmatprep.mubr.msk.f32.mxu0 %vm2030_vm0, %v2031_v2 }
  0x71   : > { %1726 = vmatprep.subr.bf16.mxu0 %v2029_v1 }
  0x74   : > { %1728 = vmatpush3.bf16.msra.mxu0 %v2281_v41 }
  0x75   : > { %1735 = vmatprep.subr.bf16.mxu0 %v2029_v1 }
  0x77   : > { %1624 = vmatmul.mubr.f32.vlgmr.msra.gmra.mrb[2].mxu0 %v2031_v2 }
  0x78   : > { %1737 = vmatpush3.bf16.msra.mxu0 %v2246_v18  ;;  %1645 = vmatprep.mubr.msk.f32.mxu0 %vm2030_vm0, %v2031_v2 }
  0x79   : > { %1738 = vmatprep.subr.bf16.mxu0 %v2029_v1 }
  0x7c   : > { %1740 = vmatpush3.bf16.msra.mxu0 %v2281_v41 }
  0x7d   : > { %1747 = vmatprep.subr.bf16.mxu0 %v2029_v1 }
 0x142   : > { %v417_v42 = vpop.f32.mrb[0].mxu0 }
 0x143   : > { %v1603_v43 = vpop.f32.mrb[1].mxu0  ;;  %1613 = vmatmul.mubr.msk.f32.vlgmr.msra.gmra.mrb[0].mxu1 %vm427_vm9, %v417_v42 }
 0x144   : > { %1731 = vmatpush3.bf16.msra.mxu1 %v2246_v18  ;;  %1634 = vmatprep.mubr.msk.f32.mxu1 %vm2030_vm0, %v2031_v2 }
 0x145   : > { %1732 = vmatprep.subr.bf16.mxu1 %v2029_v1 }
 0x148   : > { %1734 = vmatpush3.bf16.msra.mxu1 %v2281_v41 }
 0x149   : > { %1741 = vmatprep.subr.bf16.mxu1 %v2029_v1 }
 0x14a   : > { %v573_v44 = vpop.f32.mrb[2].mxu0 }
 0x14b   : > { %v1625_v45 = vpop.f32.mrb[3].mxu0 }
 0x216   : > { %v497_v47 = vpop.f32.mrb[0].mxu1 }
 0x217   : > { %v2306_v48 = vadd.f32 %v1529_v46, %v497_v47  ;;  %v1614_v49 = vpop.f32.mrb[1].mxu1 }
 0x219   : > { %v577_v52 = vadd.f32 %v573_v44, %v2306_v48 }
 0x21b   : > { %v578_v53 = vmul.f32 %v577_v52, %v2308_v51 }
 0x21d   : > { %1846 = vtanh.f32 %v578_v53 }
 0x227   : > { %v1847_v54 = vpop.eup %1846 }
 0x228   : > { %v580_v56 = vmul.f32 %v1847_v54, %v2308_v51 }
 0x22a   : > { %v581_v57 = vadd.f32 %v580_v56, %v2313_v55 }
 0x22c   : > { %584 = vrot.lane.b32.xlu0 %v581_v57, %s2033_s10  ;;  %v582_v60 = vmul.f32 0.0, %v581_v57 }
 0x29e   : > { %v585_v58 = vpop.permute.xlu0 %584 }
 0x29f   : > { %v587_v59 = vmul.f32 %v585_v58, %v581_v57 }
 0x2a1   : > { %589 = vrot.lane.b32.xlu0 %v587_v59, %s2033_s10 }
 0x313   : > { %v590_v61 = vpop.permute.xlu0 %589 }
 0x314   : > { %v592_v62 = vadd.f32 %v590_v61, %v582_v60 }
 0x316   : > { %1848 = vtanh.f32 %v592_v62  ;;  %v683_v15 = vrot.slane %v592_v62, 7 }
 0x320   : > { %v1849_v63 = vpop.eup %1848 }
 0x321   : > { %595 = vrot.lane.b32.xlu1 %v1849_v63, %s2033_s10 }
 0x393   : > { %v596_v0 = vpop.permute.xlu1 %595 }
 0x394   : > { %v2320_v3 = vmul.f32 %v596_v0, %v581_v57 }
 0x396   : > { %600 = vrot.lane.b32.xlu1 %v2320_v3, %s2034_s12 }
 0x408   : > { %v601_v4 = vpop.permute.xlu1 %600 }
 0x409   : > { %1635 = vmatmul.mubr.msk.f32.vlgmr.msra.gmra.mrb[2].mxu1 %vm427_vm9, %v601_v4 }
 0x40a   : > { %1743 = vmatpush3.bf16.msra.mxu1 %v2246_v18  ;;  %1656 = vmatprep.mubr.msk.f32.mxu1 %vm2030_vm0, %v2031_v2 }
 0x40b   : > { %1744 = vmatprep.subr.bf16.mxu1 %v2029_v1 }
 0x40e   : > { %1746 = vmatpush3.bf16.msra.mxu1 %v2281_v41 }
 0x40f   : > { %1753 = vmatprep.subr.bf16.mxu1 %v2029_v1 }
 0x4dc   : > { %v670_v5 = vpop.f32.mrb[2].mxu1 }
 0x4dd   : > { %v675_v6 = vrot.slane %v670_v5, 7  ;;  %v1636_v7 = vpop.f32.mrb[3].mxu1 }
 0x4df   : > { %v677_v8 = vadd.f32 %v675_v6, %v2306_v48 }
 0x4e1   : > { %v678_v9 = vmul.f32 %v677_v8, %v2308_v51 }
 0x4e3   : > { %1850 = vtanh.f32 %v678_v9 }
 0x4ed   : > { %v1851_v10 = vpop.eup %1850 }
 0x4ee   : > { %v680_v11 = vmul.f32 %v1851_v10, %v2308_v51 }
 0x4f0   : > { %v681_v12 = vadd.f32 %v680_v11, %v2313_v55 }
 0x4f2   : > { %687 = vrot.lane.b32.xlu0 %v681_v12, %s2033_s10  ;;  %v685_v16 = vmul.f32 %v683_v15, %v681_v12 }
 0x564   : > { %v688_v13 = vpop.permute.xlu0 %687 }
 0x565   : > { %v690_v14 = vmul.f32 %v688_v13, %v681_v12 }
 0x567   : > { %692 = vrot.lane.b32.xlu1 %v690_v14, %s2033_s10 }
 0x5d9   : > { %v693_v17 = vpop.permute.xlu1 %692 }
 0x5da   : > { %v695_v19 = vadd.f32 %v693_v17, %v685_v16 }
 0x5dc   : > { %1852 = vtanh.f32 %v695_v19  ;;  %v787_v35 = vrot.slane %v695_v19, 7 }
 0x5e6   : > { %v1853_v20 = vpop.eup %1852 }
 0x5e7   : > { %698 = vrot.lane.b32.xlu0 %v1853_v20, %s2033_s10 }
 0x659   : > { %v699_v21 = vpop.permute.xlu0 %698 }
 0x65a   : > { %v701_v22 = vmul.f32 %v699_v21, %v681_v12 }
 0x65c   : > { %v703_v23 = vrot.slane %v701_v22, 1  ;;  %v1326_v43 = vsel %vm333_vm1, %v2320_v3, %v701_v22 }
 0x65e   : > { %704 = vrot.lane.b32.xlu1 %v703_v23, %s2034_s12 }
 0x6d0   : > { %v705_v24 = vpop.permute.xlu1 %704 }
 0x6d1   : > { %1646 = vmatmul.mubr.msk.f32.vlgmr.msra.gmra.mrb[4].mxu0 %vm427_vm9, %v705_v24 }
 0x6d2   : > { %1749 = vmatpush3.bf16.msra.mxu0 %v2246_v18  ;;  %1667 = vmatprep.mubr.msk.f32.mxu0 %vm2030_vm0, %v2031_v2 }
 0x6d3   : > { %1750 = vmatprep.subr.bf16.mxu0 %v2029_v1 }
 0x6d6   : > { %1752 = vmatpush3.bf16.msra.mxu0 %v2281_v41 }
 0x6d7   : > { %1759 = vmatprep.subr.bf16.mxu0 %v2029_v1 }
 0x7a4   : > { %v774_v25 = vpop.f32.mrb[4].mxu0 }
 0x7a5   : > { %v779_v26 = vrot.slane %v774_v25, 6  ;;  %v1647_v27 = vpop.f32.mrb[5].mxu0 }
 0x7a7   : > { %v781_v28 = vadd.f32 %v779_v26, %v2306_v48 }
 0x7a9   : > { %v782_v29 = vmul.f32 %v781_v28, %v2308_v51 }
 0x7ab   : > { %1854 = vtanh.f32 %v782_v29 }
 0x7b5   : > { %v1855_v30 = vpop.eup %1854 }
 0x7b6   : > { %v784_v31 = vmul.f32 %v1855_v30, %v2308_v51 }
 0x7b8   : > { %v785_v32 = vadd.f32 %v784_v31, %v2313_v55 }
 0x7ba   : > { %791 = vrot.lane.b32.xlu0 %v785_v32, %s2033_s10  ;;  %v789_v36 = vmul.f32 %v787_v35, %v785_v32 }
 0x82c   : > { %v792_v33 = vpop.permute.xlu0 %791 }
 0x82d   : > { %v794_v34 = vmul.f32 %v792_v33, %v785_v32 }
 0x82f   : > { %796 = vrot.lane.b32.xlu1 %v794_v34, %s2033_s10 }
 0x8a1   : > { %v797_v37 = vpop.permute.xlu1 %796 }
 0x8a2   : > { %v799_v38 = vadd.f32 %v797_v37, %v789_v36 }
 0x8a4   : > { %1856 = vtanh.f32 %v799_v38  ;;  %v891_v60 = vrot.slane %v799_v38, 7 }
 0x8ae   : > { %v1857_v39 = vpop.eup %1856 }
 0x8af   : > { %802 = vrot.lane.b32.xlu0 %v1857_v39, %s2033_s10 }
 0x921   : > { %v803_v40 = vpop.permute.xlu0 %802 }
 0x922   : > { %v805_v42 = vmul.f32 %v803_v40, %v785_v32 }
 0x924   : > { %v807_v44 = vrot.slane %v805_v42, 2  ;;  %v1327_v45 = vsel %vm335_vm2, %v1326_v43, %v805_v42 }
 0x926   : > { %808 = vrot.lane.b32.xlu1 %v807_v44, %s2034_s12 }
 0x998   : > { %v809_v46 = vpop.permute.xlu1 %808 }
 0x999   : > { %1657 = vmatmul.mubr.msk.f32.vlgmr.msra.gmra.mrb[4].mxu1 %vm427_vm9, %v809_v46 }
 0x99a   : > { %1755 = vmatpush3.bf16.msra.mxu1 %v2246_v18  ;;  %1678 = vmatprep.mubr.msk.f32.mxu1 %vm2030_vm0, %v2031_v2 }
 0x99b   : > { %1756 = vmatprep.subr.bf16.mxu1 %v2029_v1 }
 0x99e   : > { %1758 = vmatpush3.bf16.msra.mxu1 %v2281_v41 }
 0x99f   : > { %1765 = vmatprep.subr.bf16.mxu1 %v2029_v1 }
 0xa6c   : > { %v878_v47 = vpop.f32.mrb[4].mxu1 }
 0xa6d   : > { %v883_v49 = vrot.slane %v878_v47, 5  ;;  %v1658_v50 = vpop.f32.mrb[5].mxu1 }
 0xa6f   : > { %v885_v52 = vadd.f32 %v883_v49, %v2306_v48 }
 0xa71   : > { %v886_v53 = vmul.f32 %v885_v52, %v2308_v51 }
 0xa73   : > { %1858 = vtanh.f32 %v886_v53 }
 0xa7d   : > { %v1859_v54 = vpop.eup %1858 }
 0xa7e   : > { %v888_v56 = vmul.f32 %v1859_v54, %v2308_v51 }
 0xa80   : > { %v889_v57 = vadd.f32 %v888_v56, %v2313_v55 }
 0xa82   : > { %895 = vrot.lane.b32.xlu0 %v889_v57, %s2033_s10  ;;  %v893_v61 = vmul.f32 %v891_v60, %v889_v57 }
 0xaf4   : > { %v896_v58 = vpop.permute.xlu0 %895 }
 0xaf5   : > { %v898_v59 = vmul.f32 %v896_v58, %v889_v57 }
 0xaf7   : > { %900 = vrot.lane.b32.xlu1 %v898_v59, %s2033_s10 }
 0xb69   : > { %v901_v62 = vpop.permute.xlu1 %900 }
 0xb6a   : > { %v903_v63 = vadd.f32 %v901_v62, %v893_v61 }
 0xb6c   : > { %1860 = vtanh.f32 %v903_v63  ;;  %v995_v19 = vrot.slane %v903_v63, 7 }
 0xb76   : > { %v1861_v0 = vpop.eup %1860 }
 0xb77   : > { %906 = vrot.lane.b32.xlu0 %v1861_v0, %s2033_s10 }
 0xbe9   : > { %v907_v3 = vpop.permute.xlu0 %906 }
 0xbea   : > { %v909_v4 = vmul.f32 %v907_v3, %v889_v57 }
 0xbec   : > { %v911_v5 = vrot.slane %v909_v4, 3  ;;  %v1328_v6 = vsel %vm337_vm3, %v1327_v45, %v909_v4 }
 0xbee   : > { %912 = vrot.lane.b32.xlu1 %v911_v5, %s2034_s12 }
 0xc60   : > { %v913_v7 = vpop.permute.xlu1 %912 }
 0xc61   : > { %1668 = vmatmul.mubr.msk.f32.vlgmr.msra.gmra.mrb[6].mxu0 %vm427_vm9, %v913_v7 }
 0xc62   : > { %1761 = vmatpush3.bf16.msra.mxu0 %v2246_v18  ;;  %1689 = vmatprep.mubr.msk.f32.mxu0 %vm2030_vm0, %v2031_v2 }
 0xc63   : > { %1762 = vmatprep.subr.bf16.mxu0 %v2029_v1 }
 0xc66   : > { %1764 = vmatpush3.bf16.msra.mxu0 %v2281_v41 }
 0xc67   : > { %1771 = vmatprep.subr.bf16.mxu0 %v2029_v1 }
 0xd34   : > { %v982_v8 = vpop.f32.mrb[6].mxu0 }
 0xd35   : > { %v987_v9 = vrot.slane %v982_v8, 4  ;;  %v1669_v10 = vpop.f32.mrb[7].mxu0 }
 0xd37   : > { %v989_v11 = vadd.f32 %v987_v9, %v2306_v48 }
 0xd39   : > { %v990_v12 = vmul.f32 %v989_v11, %v2308_v51 }
 0xd3b   : > { %1862 = vtanh.f32 %v990_v12 }
 0xd45   : > { %v1863_v13 = vpop.eup %1862 }
 0xd46   : > { %v992_v14 = vmul.f32 %v1863_v13, %v2308_v51 }
 0xd48   : > { %v993_v15 = vadd.f32 %v992_v14, %v2313_v55 }
 0xd4a   : > { %999 = vrot.lane.b32.xlu0 %v993_v15, %s2033_s10  ;;  %v997_v20 = vmul.f32 %v995_v19, %v993_v15 }
 0xdbc   : > { %v1000_v16 = vpop.permute.xlu0 %999 }
 0xdbd   : > { %v1002_v17 = vmul.f32 %v1000_v16, %v993_v15 }
 0xdbf   : > { %1004 = vrot.lane.b32.xlu1 %v1002_v17, %s2033_s10 }
 0xe31   : > { %v1005_v21 = vpop.permute.xlu1 %1004 }
 0xe32   : > { %v1007_v22 = vadd.f32 %v1005_v21, %v997_v20 }
 0xe34   : > { %1864 = vtanh.f32 %v1007_v22 }
 0xe3e   : > { %v1865_v23 = vpop.eup %1864 }
 0xe3f   : > { %1010 = vrot.lane.b32.xlu0 %v1865_v23, %s2033_s10 }
 0xeb1   : > { %v1011_v24 = vpop.permute.xlu0 %1010 }
 0xeb2   : > { %v1013_v25 = vmul.f32 %v1011_v24, %v993_v15  ;;  %v281_v24 = vld [vmem:[%s2498_s5 + $0x18] sm:$0xff] }
 0xeb4   : > { %v1015_v26 = vrot.slane %v1013_v25, 4  ;;  %v1329_v27 = vsel %vm339_vm4, %v1328_v6, %v1013_v25 }
 0xeb6   : > { %1016 = vrot.lane.b32.xlu1 %v1015_v26, %s2034_s12 }
 0xf28   : > { %v1017_v28 = vpop.permute.xlu1 %1016 }
 0xf29   : > { %1679 = vmatmul.mubr.msk.f32.vlgmr.msra.gmra.mrb[6].mxu1 %vm427_vm9, %v1017_v28 }
 0xf2a   : > { %1767 = vmatpush3.bf16.msra.mxu1 %v2246_v18  ;;  %1700 = vmatprep.mubr.msk.f32.mxu1 %vm2030_vm0, %v2031_v2 }
 0xf2b   : > { %1768 = vmatprep.subr.bf16.mxu1 %v2029_v1 }
 0xf2e   : > { %1770 = vmatpush3.bf16.msra.mxu1 %v2281_v41  ;;  %v1099_v41 = vrot.slane %v1007_v22, 7 }
 0xffc   : > { %v1086_v29 = vpop.f32.mrb[6].mxu1 }
 0xffd   : > { %v1091_v30 = vrot.slane %v1086_v29, 3  ;;  %v1680_v31 = vpop.f32.mrb[7].mxu1 }
 0xffe   : > { %v1538_v31 = vld [vmem:[%s2499_s6] ss:$0 sm:$0xff] }
 0xfff   : > { %v1093_v32 = vadd.f32 %v1091_v30, %v2306_v48 }
0x1001   : > { %v1094_v33 = vmul.f32 %v1093_v32, %v2308_v51 }
0x1003   : > { %1866 = vtanh.f32 %v1094_v33 }
0x100d   : > { %v1867_v34 = vpop.eup %1866 }
0x100e   : > { %v1096_v35 = vmul.f32 %v1867_v34, %v2308_v51 }
0x1010   : > { %v1097_v18 = vadd.f32 %v1096_v35, %v2313_v55 }
0x1012   : > { %1103 = vrot.lane.b32.xlu0 %v1097_v18, %s2033_s10  ;;  %v1101_v38 = vmul.f32 %v1099_v41, %v1097_v18 }
0x1084   : > { %v1104_v36 = vpop.permute.xlu0 %1103 }
0x1085   : > { %v1106_v37 = vmul.f32 %v1104_v36, %v1097_v18 }
0x1087   : > { %1108 = vrot.lane.b32.xlu1 %v1106_v37, %s2033_s10 }
0x10f9   : > { %v1109_v39 = vpop.permute.xlu1 %1108 }
0x10fa   : > { %v1111_v40 = vadd.f32 %v1109_v39, %v1101_v38 }
0x10fc   : > { %1868 = vtanh.f32 %v1111_v40 }
0x1106   : > { %v1869_v42 = vpop.eup %1868 }
0x1107   : > { %1114 = vrot.lane.b32.xlu0 %v1869_v42, %s2033_s10 }
0x1179   : > { %v1115_v43 = vpop.permute.xlu0 %1114 }
0x117a   : > { %v1117_v44 = vmul.f32 %v1115_v43, %v1097_v18 }
0x117c   : > { %v1119_v45 = vrot.slane %v1117_v44, 5  ;;  %v1330_v46 = vsel %vm341_vm5, %v1329_v27, %v1117_v44 }
0x117e   : > { %1120 = vrot.lane.b32.xlu1 %v1119_v45, %s2034_s12 }
0x11f0   : > { %v1121_v47 = vpop.permute.xlu1 %1120 }
0x11f1   : > { %1690 = vmatmul.mubr.msk.f32.vlgmr.msra.gmra.mrb[8].mxu0 %vm427_vm9, %v1121_v47 }
0x11f2   : > { %1711 = vmatprep.mubr.msk.f32.mxu0 %vm2030_vm0, %v2031_v2  ;;  %v1203_v2 = vrot.slane %v1111_v40, 7  ;;  %vm1414_vm0 = vcmask 64512  }
0x12c4   : > { %v1190_v49 = vpop.f32.mrb[8].mxu0 }
0x12c5   : > { %v1195_v50 = vrot.slane %v1190_v49, 2  ;;  %v1691_v52 = vpop.f32.mrb[9].mxu0 }
0x12c7   : > { %v1197_v53 = vadd.f32 %v1195_v50, %v2306_v48 }
0x12c9   : > { %v1198_v54 = vmul.f32 %v1197_v53, %v2308_v51 }
0x12cb   : > { %1870 = vtanh.f32 %v1198_v54 }
0x12d5   : > { %v1871_v56 = vpop.eup %1870 }
0x12d6   : > { %v1200_v57 = vmul.f32 %v1871_v56, %v2308_v51 }
0x12d8   : > { %v1201_v58 = vadd.f32 %v1200_v57, %v2313_v55 }
0x12da   : > { %1207 = vrot.lane.b32.xlu0 %v1201_v58, %s2033_s10  ;;  %v1205_v61 = vmul.f32 %v1203_v2, %v1201_v58 }
0x134c   : > { %v1208_v59 = vpop.permute.xlu0 %1207 }
0x134d   : > { %v1210_v60 = vmul.f32 %v1208_v59, %v1201_v58 }
0x134f   : > { %1212 = vrot.lane.b32.xlu1 %v1210_v60, %s2033_s10 }
0x13c1   : > { %v1213_v62 = vpop.permute.xlu1 %1212 }
0x13c2   : > { %v1215_v63 = vadd.f32 %v1213_v62, %v1205_v61 }
0x13c4   : > { %1872 = vtanh.f32 %v1215_v63  ;;  %v1307_v19 = vrot.slane %v1215_v63, 7 }
0x13ce   : > { %v1873_v0 = vpop.eup %1872 }
0x13cf   : > { %1218 = vrot.lane.b32.xlu0 %v1873_v0, %s2033_s10 }
0x1441   : > { %v1219_v3 = vpop.permute.xlu0 %1218 }
0x1442   : > { %v1221_v4 = vmul.f32 %v1219_v3, %v1201_v58 }
0x1444   : > { %v1223_v5 = vrot.slane %v1221_v4, 6  ;;  %v1331_v6 = vsel %vm343_vm6, %v1330_v46, %v1221_v4 }
0x1446   : > { %1224 = vrot.lane.b32.xlu1 %v1223_v5, %s2034_s12 }
0x14b8   : > { %v1225_v7 = vpop.permute.xlu1 %1224 }
0x14b9   : > { %1701 = vmatmul.mubr.msk.f32.vlgmr.msra.gmra.mrb[8].mxu1 %vm427_vm9, %v1225_v7 }
0x158c   : > { %v1294_v8 = vpop.f32.mrb[8].mxu1 }
0x158d   : > { %v1299_v9 = vrot.slane %v1294_v8, 1  ;;  %v1702_v10 = vpop.f32.mrb[9].mxu1 }
0x158f   : > { %v1301_v11 = vadd.f32 %v1299_v9, %v2306_v48  ;;  %v278_v48 = vld [vmem:[%s2498_s5] sm:$0xff] }
0x1591   : > { %v1302_v12 = vmul.f32 %v1301_v11, %v2308_v51 }
0x1593   : > { %1874 = vtanh.f32 %v1302_v12 }
0x159d   : > { %v1875_v13 = vpop.eup %1874 }
0x159e   : > { %v1304_v14 = vmul.f32 %v1875_v13, %v2308_v51  ;;  %v279_v51 = vld [vmem:[%s2498_s5 + $0x8] sm:$0xff] }
0x159f   : > { %v1772_v23 = vpack.c.bf16 %v279_v51, %v278_v48 }
0x15a0   : > { %v1305_v15 = vadd.f32 %v1304_v14, %v2313_v55  ;;  %v280_v55 = vld [vmem:[%s2498_s5 + $0x10] sm:$0xff] }
0x15a1   : > { %1773 = vmatpush3.bf16.msra.mxu0 %v1772_v23  ;;  %v1775_v25 = vpack.c.bf16 %v281_v24, %v280_v55 }
0x15a2   : > { %1311 = vrot.lane.b32.xlu0 %v1305_v15, %s2033_s10  ;;  %v1309_v20 = vmul.f32 %v1307_v19, %v1305_v15  ;;  %1774 = vmatprep.subr.bf16.mxu0 %v2029_v1 }
0x15a5   : > { %1776 = vmatpush3.bf16.msra.mxu0 %v1775_v25 }
0x1614   : > { %v1312_v16 = vpop.permute.xlu0 %1311 }
0x1615   : > { %v1314_v17 = vmul.f32 %v1312_v16, %v1305_v15 }
0x1617   : > { %1316 = vrot.lane.b32.xlu1 %v1314_v17, %s2033_s10 }
0x1689   : > { %v1317_v21 = vpop.permute.xlu1 %1316 }
0x168a   : > { %v1319_v22 = vadd.f32 %v1317_v21, %v1309_v20 }
0x168c   : > { %1876 = vtanh.f32 %v1319_v22 }
0x1696   : > { %v1877_v26 = vpop.eup %1876 }
0x1697   : > { %1322 = vrot.lane.b32.xlu0 %v1877_v26, %s2033_s10  ;;  %s1442_s10 = sshll.u32 %s266_s28, 4  ;;  %s2452_s10 = int_to_ptr.vmem [resolvable:$true] %s1442_s10 }
0x1698   : > { %s1950_s22 = scalar_lea.vmem %s2452_s10, 128  ;;  %p1957_p8 = scmp.lt.s32.totalorder %s2452_s10, %s1955_s24 }
0x1699   : > { %p1951_p3 = scmp.ne.s32.totalorder %s2452_s10, %s1950_s22  ;;  %p1958_p9 = scmp.lt.s32.totalorder %s1956_s26, %s1950_s22 }
0x169b   : > { %p1952_p6 = pnand %p1951_p3, %p2513_p1  ;;  %p1959_p12 = por %p1958_p9, %p1957_p8 }
0x169d   : > { %p1953_p7 = pneg %p1952_p6 }
0x169f   : > { %p1960_p13 = pnand %p1959_p12, %p1953_p7 }
0x1709   : > { %v1323_v27 = vpop.permute.xlu0 %1322 }
0x170a   : > { %v1325_v28 = vmul.f32 %v1323_v27, %v1305_v15 }
0x170c   : > { %v1332_v29 = vsel %vm345_vm7, %v1331_v6, %v1325_v28 }
0x170d   : > { %1340 = vrot.lane.b32.xlu1 %v1332_v29, %s2034_s12 }
0x177f   : > { %v1341_v30 = vpop.permute.xlu1 %1340 }
0x1780   : > { %1712 = vmatmul.mubr.msk.f32.vlgmr.msra.gmra.mrb[10].mxu0 %vm427_vm9, %v1341_v30 }
0x1853   : > { %v1410_v32 = vpop.f32.mrb[10].mxu0 }
0x1854   : > { %v1411_v1 = vadd.f32 %v1538_v31, %v1410_v32  ;;  %v1713_v33 = vpop.f32.mrb[11].mxu0 }
0x1856   : > { %v1415_v34 = vsel %vm1414_vm0, %v1411_v1, -inf }
0x1857   : > { %1416 = vmax.xlane.f32.xlu0 %v1415_v34 }
0x18e4   : > { %v1417_v35 = vpop.xlane.xlu0 %1416 }
0x18e5   : > { %v1418_v18 = vsub.f32 %v1411_v1, %v1417_v35 }
0x18e7   : > { %v1419_v36 = vmul.f32 1.442695, %v1418_v18 }
0x18e9   : > { %1878 = vpow2.f32 %v1419_v36 }
0x18f3   : > { %v1879_v37 = vpop.eup %1878 }
0x18f4   : > { %v1421_v41 = vsel %vm1414_vm0, %v1879_v37, 0.0 }
0x18f5   : > { %1422 = vadd.xlane.f32.xlu1 %v1421_v41 }
0x1982   : > { %v1423_v38 = vpop.xlane.xlu1 %1422 }
0x1983   : > { %1880 = vlog2.f32 %v1423_v38 }
0x198d   : > { %v1881_v39 = vpop.eup %1880 }
0x198e   : > { %v1425_v40 = vmul.f32 0.6931472, %v1881_v39 }
0x1990   : > { %v1426_v42 = vsub.f32 %v1418_v18, %v1425_v40 }
0x1992   : > { %1427 = vst.msk [vmem:[%s266_s28] sm:$0xff] %vm1414_vm0, %v1426_v42 }
0x1993   : > { %1963 = shalt.err (!%p1960_p13)
}
0x1994   : > { %s1964_s20 = scalar_lea.hbm %s2450_s21, 128  ;;  %s1968_s18 = scalar_lea.hbm %s2500_s7, 256 }
0x1995   : > { %p1965_p2 = scmp.ne.s32.totalorder %s2450_s21, %s1964_s20  ;;  %p1969_p5 = scmp.lt.u32.totalorder %s2450_s21, %s2500_s7 }
0x1996   : > { %p1970_p11 = scmp.lt.u32.totalorder %s1968_s18, %s1964_s20  ;;  %p1972_p3 = scmp.lt.u32.totalorder %s1964_s20, %s2450_s21 }
0x1997   : > { %p1966_p4 = pnand %p1965_p2, %p2513_p1 }
0x1998   : > { %p1971_p0 = por %p1970_p11, %p1969_p5 }
0x1999   : > { %p1967_p10 = pneg %p1966_p4 }
0x199a   : > { %p1973_p6 = por %p1972_p3, %p1971_p0 }
0x199c   : > { %p1974_p7 = pnand %p1973_p6, %p1967_p10 }
0x199e   : > { %1977 = shalt.err (!%p1974_p7)
}
0x199f   : > { %1785 = dma.vmem_to_hbm [thread:$0]  (%p2513_p1), %s2452_s10, 128, %s2450_s21, %s1429_s23  }
0x19a0 PF: > { %p1802_p8 = scmp.ge.s32.totalorder %s2022_s8, 2  ;;  %s1454_s28 = sand.u32 1, %s2010_s29  }
0x19a1   : > { %p2514_p9 = scmp.ne.s32.totalorder %s2505_s16, 0  ;;  %s1455_s12 = scalar_lea.sflag [#allocation6], %s1454_s28 }
0x19a3   : > { %p1795_p12 = pnand %p1802_p8, %p2514_p9 }
0x19a5   : > { %2005 = dma.done.wait (!%p1795_p12), %s1455_s12, 128  }
0x19a6   : > { %2007 = vsyncadd (!%p1795_p12), %s1455_s12, 4294967168  ;;  %p25_p13 = scmp.ge.s32.totalorder %s2104_s11, 4   ;;  %s2515_s29 = smov %s2014_s0 }
0x19a7   : > { %s2516_s0 = smov %s2018_s30  ;;  %s2517_s30 = smov %s2115_s14 }
0x19a8   : > { %s2518_s8 = smov %s2104_s11  ;;  %27 = sbr.rel (!%p25_p13) target bundleno = 20 (0x14), region = 85 }
0x19af   :  { %1460 = vsyncpa [#allocation5], 1 }
0x19b0   :  { %1462 = vsyncpa [#allocation5 + $0x1], 1 }
0x19b1   :  { %1463 = vsyncpa [#allocation8], 1 }
0x19b2   :  { %1464 = vsyncpa [#allocation6], 1 }
0x19b3   :  { %1466 = vsyncpa [#allocation6 + $0x1], 1 }

</bundles_post_ra>
